<compile_context>
chip_gen: v6e
topology: v6e:2x2x1
jax: 0.10.0
libtpu: 0.0.40
codegen_flags: <defaults>
</compile_context>

<pallas_src>
import functools

import jax
import jax.numpy as jnp
from jax.experimental import pallas as pl
from jax.experimental.pallas import tpu as pltpu


_VMEM_LIMIT = 32 * 1024 * 1024     # explicit, safe on v5e / v6e / v7x
_TM_DEFAULT = 2048                 # lane-dense spatial tile (multiple of 128)
_BN_EPS = 1e-5


# ----------------------------------------------------------------------------
# Pallas kernels
# ----------------------------------------------------------------------------
def _conv_bn_kernel(p_ref, wt_ref, scale_ref, shift_ref, out_ref, *, apply_relu):
    """One fused K=27*Cin matmul + folded BN affine (+ ReLU).

    p_ref:     (K, TM)   bf16   im2col patches, spatial in lanes
    wt_ref:    (Cout, K) bf16   transposed conv weight
    scale/shift: (Cout, 1) f32
    out_ref:   (Cout, TM) bf16  lane-dense output tile
    """
    acc = jnp.dot(wt_ref[...], p_ref[...],
                  preferred_element_type=jnp.float32)          # (Cout, TM) f32
    y = acc * scale_ref[...] + shift_ref[...]                   # f32 affine
    if apply_relu:
        y = jnp.maximum(y, 0.0)
    out_ref[...] = y.astype(out_ref.dtype)


def _conv_bn_res_relu_kernel(p_ref, wt_ref, scale_ref, shift_ref,
                             res_ref, out_ref):
    """Conv + BN affine + residual add + ReLU (tail of a ResidualBlock)."""
    acc = jnp.dot(wt_ref[...], p_ref[...],
                  preferred_element_type=jnp.float32)
    y = acc * scale_ref[...] + shift_ref[...]
    y = y + res_ref[...].astype(jnp.float32)
    out_ref[...] = jnp.maximum(y, 0.0).astype(out_ref.dtype)


def _linear_sigmoid_kernel(x_ref, w_ref, b_ref, o_ref):
    """Linear(F -> 1) + Sigmoid as a VPU multiply + lane reduction."""
    x = x_ref[...].astype(jnp.float32)                          # (N, F)
    y = jnp.sum(x * w_ref[...], axis=-1, keepdims=True)         # (N, 1)
    y = y + b_ref[...]
    o_ref[...] = 1.0 / (1.0 + jnp.exp(-y))


# ----------------------------------------------------------------------------
# Wrappers (glue: padding / im2col pack / reshapes only)
# ----------------------------------------------------------------------------
def _im2col_t(x):
    """x: (N, C, D, H, W) -> (N, 27*C, D*H*W) patches, bf16.

    Row index = tap*C + c with tap = kd*9 + kh*3 + kw (matches the weight
    reshape done at parameter-fold time)."""
    n, c, d, h, w = x.shape
    xp = jnp.pad(x, ((0, 0), (0, 0), (1, 1), (1, 1), (1, 1)))
    slabs = [
        xp[:, :, kd:kd + d, kh:kh + h, kw:kw + w].reshape(n, c, d * h * w)
        for kd in range(3) for kh in range(3) for kw in range(3)
    ]
    return jnp.stack(slabs, axis=1).reshape(n, 27 * c, d * h * w)


def conv3d_bn(x, wt, scale, shift, *, relu, residual=None, tm=_TM_DEFAULT):
    """Fused Conv3d(k=3,p=1) + BN(inference) [+ residual + ReLU].

    x:        (N, C, D, H, W) activations (f32 or bf16)
    wt:       (Cout, 27*Cin)  bf16 (pre-folded transposed weight)
    scale:    (Cout, 1) f32 = gamma / sqrt(running_var + eps)
    shift:    (Cout, 1) f32 = (conv_bias - running_mean) * scale + beta
    residual: optional (N, Cout, D, H, W); fused add + ReLU.
    Returns (N, Cout, D, H, W) bf16 (native NCDHW layout).
    """
    n, c, d, h, w = x.shape
    m = d * h * w
    cout, k = wt.shape
    assert k == 27 * c

    patches = _im2col_t(x).astype(jnp.bfloat16)        # (N, K, M)
    tm = m if m <= tm else tm                           # full dim or 128-multiple
    grid = (n, pl.cdiv(m, tm))

    bytes_accessed = (patches.size * 2 + wt.size * 2 + n * cout * m * 2
                      + 2 * cout * 4)
    if residual is not None:
        bytes_accessed += n * cout * m * 2
    cost = pl.CostEstimate(flops=2 * n * m * k * cout, transcendentals=0,
                           bytes_accessed=int(bytes_accessed))

    compiler_params = pltpu.CompilerParams(
        dimension_semantics=("parallel", "parallel"),
        vmem_limit_bytes=_VMEM_LIMIT)

    p_spec = pl.BlockSpec((None, k, tm), lambda ni, mi: (ni, 0, mi))
    w_spec = pl.BlockSpec((cout, k), lambda ni, mi: (0, 0))
    s_spec = pl.BlockSpec((cout, 1), lambda ni, mi: (0, 0))
    o_spec = pl.BlockSpec((None, cout, tm), lambda ni, mi: (ni, 0, mi))
    out_shape = jax.ShapeDtypeStruct((n, cout, m), jnp.bfloat16)

    if residual is None:
        out = pl.pallas_call(
            functools.partial(_conv_bn_kernel, apply_relu=relu),
            out_shape=out_shape,
            grid=grid,
            in_specs=[p_spec, w_spec, s_spec, s_spec],
            out_specs=o_spec,
            compiler_params=compiler_params,
            cost_estimate=cost,
        )(patches, wt, scale, shift)
    else:
        res_flat = residual.reshape(n, cout, m).astype(jnp.bfloat16)
        r_spec = pl.BlockSpec((None, cout, tm), lambda ni, mi: (ni, 0, mi))
        out = pl.pallas_call(
            _conv_bn_res_relu_kernel,
            out_shape=out_shape,
            grid=grid,
            in_specs=[p_spec, w_spec, s_spec, s_spec, r_spec],
            out_specs=o_spec,
            compiler_params=compiler_params,
            cost_estimate=cost,
        )(patches, wt, scale, shift, res_flat)

    return out.reshape(n, cout, d, h, w)


def linear_sigmoid(x_flat, wt, b):
    """x_flat: (N, F), wt: (1, F) f32, b: (1,) f32  ->  (N, 1) f32."""
    n, f = x_flat.shape
    return pl.pallas_call(
        _linear_sigmoid_kernel,
        out_shape=jax.ShapeDtypeStruct((n, 1), jnp.float32),
        grid=(1,),
        in_specs=[
            pl.BlockSpec((n, f), lambda i: (0, 0)),
            pl.BlockSpec((1, f), lambda i: (0, 0)),
            pl.BlockSpec((1, 1), lambda i: (0, 0)),
        ],
        out_specs=pl.BlockSpec((n, 1), lambda i: (0, 0)),
        compiler_params=pltpu.CompilerParams(
            dimension_semantics=("arbitrary",),
            vmem_limit_bytes=_VMEM_LIMIT),
    )(x_flat, wt.astype(jnp.float32), b.reshape(1, 1).astype(jnp.float32))


# ----------------------------------------------------------------------------
# Parameter construction (deterministic, synthetic; folded at init time)
# ----------------------------------------------------------------------------
def _fold_bn(conv_bias, gamma, beta, mean, var):
    scale = gamma / jnp.sqrt(var + _BN_EPS)
    shift = (conv_bias - mean) * scale + beta
    return scale, shift


def _conv_bn_params(key, cin, cout):
    ks = jax.random.split(key, 6)
    w = 0.1 * jax.random.normal(ks[0], (3, 3, 3, cin, cout), jnp.float32)
    b = 0.1 * jax.random.normal(ks[1], (cout,), jnp.float32)
    gamma = 1.0 + 0.1 * jax.random.normal(ks[2], (cout,), jnp.float32)
    beta = 0.1 * jax.random.normal(ks[3], (cout,), jnp.float32)
    mean = 0.1 * jax.random.normal(ks[4], (cout,), jnp.float32)
    var = 0.5 + jax.random.uniform(ks[5], (cout,), jnp.float32)
    scale, shift = _fold_bn(b, gamma, beta, mean, var)
    # Pre-fold into kernel-ready layouts (zero runtime cost):
    #   wt: (Cout, 27*Cin), row-major over (tap, cin) -> matches _im2col_t rows.
    wt = jnp.transpose(w.reshape(27 * cin, cout)).astype(jnp.bfloat16)
    return {"wt": wt,
            "scale": scale.reshape(cout, 1).astype(jnp.float32),
            "shift": shift.reshape(cout, 1).astype(jnp.float32)}


def init_params(key, in_channels_conv, out_channels_conv, n_features):
    keys = jax.random.split(key, 7)
    c = out_channels_conv
    return {
        "conv": _conv_bn_params(keys[0], in_channels_conv, c),
        "res1": {"c1": _conv_bn_params(keys[1], c, c),
                 "c2": _conv_bn_params(keys[2], c, c)},
        "res2": {"c1": _conv_bn_params(keys[3], c, c),
                 "c2": _conv_bn_params(keys[4], c, c)},
        "linear": {
            # stored already transposed (1, F); NCDHW layout means the flatten
            # order matches PyTorch, so no row permutation is needed.
            "wt": 0.05 * jax.random.normal(keys[5], (1, n_features), jnp.float32),
            "b": 0.05 * jax.random.normal(keys[6], (1,), jnp.float32),
        },
    }


# ----------------------------------------------------------------------------
# Forward pass (mirrors FitnessEstimator.forward, inference semantics)
# ----------------------------------------------------------------------------
def residual_block(x, p):
    # Conv -> BN -> ReLU -> Dropout(identity) -> Conv -> BN -> Dropout(identity)
    # -> (+residual) -> ReLU          (last conv fused with add + ReLU)
    h = conv3d_bn(x, p["c1"]["wt"], p["c1"]["scale"], p["c1"]["shift"], relu=True)
    return conv3d_bn(h, p["c2"]["wt"], p["c2"]["scale"], p["c2"]["shift"],
                     relu=False, residual=x)


@jax.jit
def fitness_estimator_forward(x_ncdhw, params):
    x = x_ncdhw.astype(jnp.float32)                         # NCDHW, native layout

    h = conv3d_bn(x, params["conv"]["wt"], params["conv"]["scale"],
                  params["conv"]["shift"], relu=True)       # ConvolutionalBlock
    h = residual_block(h, params["res1"])                   # ResidualBlock
    # nn.ReLU() here is a no-op: ResidualBlock output is already ReLU'd.
    h = residual_block(h, params["res2"])                   # ResidualBlock
    # nn.ReLU() no-op again.
    # TODO(synk): Dropout(p=0.5) -> identity (inference mode)

    # Flatten: activations are already NCDHW, so this matches PyTorch order.
    n = h.shape[0]
    flat = h.reshape(n, -1)                                  # (N, n_features)

    out = linear_sigmoid(flat, params["linear"]["wt"], params["linear"]["b"])
    return jnp.squeeze(out)                                  # (N,)


# ----------------------------------------------------------------------------
if __name__ == "__main__":
    # Small, self-consistent shapes:
    #   in_channels_conv=4, out_channels_conv=in_out_channels_res=8,
    #   spatial D=H=W=4  =>  n_features = 8*4*4*4 = 512
    N, CIN, COUT, D, H, W = 2, 4, 8, 4, 4, 4
    N_FEATURES = COUT * D * H * W

    key = jax.random.PRNGKey(0)
    k_x, k_p = jax.random.split(key)

    x = jax.random.normal(k_x, (N, CIN, D, H, W), jnp.float32)   # NCDHW, like PyTorch
    params = init_params(k_p, CIN, COUT, N_FEATURES)

    y = fitness_estimator_forward(x, params)
    y = jax.block_until_ready(y)

    assert y.shape == (N,), y.shape
    assert bool(jnp.all(jnp.isfinite(y)))
    assert bool(jnp.all((y >= 0.0) & (y <= 1.0)))
    print("KERNEL_OK")
</pallas_src>

<mosaic_0001>
module attributes {stable_mosaic.version = 11 : i64} {
  func.func @_conv_bn_kernel(%arg0: i32, %arg1: i32, %arg2: memref<1x108x64xbf16, #tpu.memory_space<vmem>>, %arg3: memref<8x108xbf16, #tpu.memory_space<vmem>>, %arg4: memref<8x1xf32, #tpu.memory_space<vmem>>, %arg5: memref<8x1xf32, #tpu.memory_space<vmem>>, %arg6: memref<1x8x64xbf16, #tpu.memory_space<vmem>>) attributes {dimension_semantics = [#tpu.dimension_semantics<parallel>, #tpu.dimension_semantics<parallel>], iteration_bounds = array<i64: 2, 1>, scalar_prefetch = 0 : i64, scratch_operands = 0 : i64, tpu.core_type = #tpu.core_type<tc>, window_params = [{transform_indices = @transform_0, window_bounds = array<i64: 1, 108, 64>}, {pipeline_mode = #tpu.pipeline_mode<synchronous>, transform_indices = @transform_1, window_bounds = array<i64: 8, 108>}, {pipeline_mode = #tpu.pipeline_mode<synchronous>, transform_indices = @transform_2, window_bounds = array<i64: 8, 1>}, {pipeline_mode = #tpu.pipeline_mode<synchronous>, transform_indices = @transform_3, window_bounds = array<i64: 8, 1>}, {transform_indices = @transform_4, window_bounds = array<i64: 1, 8, 64>}]} {
    %c0 = arith.constant 0 : index
    %c0_0 = arith.constant 0 : index
    %0 = vector.load %arg3[%c0, %c0_0] : memref<8x108xbf16, #tpu.memory_space<vmem>>, vector<8x108xbf16>
    %c0_1 = arith.constant 0 : index
    %c0_2 = arith.constant 0 : index
    %c0_3 = arith.constant 0 : index
    %1 = vector.load %arg2[%c0_1, %c0_2, %c0_3] : memref<1x108x64xbf16, #tpu.memory_space<vmem>>, vector<1x108x64xbf16>
    %2 = vector.shape_cast %1 : vector<1x108x64xbf16> to vector<108x64xbf16>
    %cst = arith.constant dense<0.000000e+00> : vector<8x64xf32>
    %3 = tpu.matmul %0, %2, %cst {dimension_numbers = #tpu.dot_dimension_numbers<[1], [0], [0], [1], [0, 0, 1, 1], [], []>} : vector<8x108xbf16>, vector<108x64xbf16>, vector<8x64xf32> -> vector<8x64xf32>
    %c0_4 = arith.constant 0 : index
    %c0_5 = arith.constant 0 : index
    %4 = vector.load %arg4[%c0_4, %c0_5] : memref<8x1xf32, #tpu.memory_space<vmem>>, vector<8x1xf32>
    %5 = vector.broadcast %4 : vector<8x1xf32> to vector<8x64xf32>
    %6 = arith.mulf %3, %5 : vector<8x64xf32>
    %c0_6 = arith.constant 0 : index
    %c0_7 = arith.constant 0 : index
    %7 = vector.load %arg5[%c0_6, %c0_7] : memref<8x1xf32, #tpu.memory_space<vmem>>, vector<8x1xf32>
    %8 = vector.broadcast %7 : vector<8x1xf32> to vector<8x64xf32>
    %9 = arith.addf %6, %8 : vector<8x64xf32>
    %cst_8 = arith.constant 0.000000e+00 : f32
    %10 = vector.broadcast %cst_8 : f32 to vector<8x64xf32>
    %11 = arith.maximumf %9, %10 : vector<8x64xf32>
    %12 = arith.truncf %11 : vector<8x64xf32> to vector<8x64xbf16>
    %c0_9 = arith.constant 0 : index
    %c0_10 = arith.constant 0 : index
    %c0_11 = arith.constant 0 : index
    %13 = vector.load %arg6[%c0_9, %c0_10, %c0_11] : memref<1x8x64xbf16, #tpu.memory_space<vmem>>, vector<1x8x64xbf16>
    %14 = vector.shape_cast %13 : vector<1x8x64xbf16> to vector<8x64xbf16>
    %15 = vector.shape_cast %12 : vector<8x64xbf16> to vector<1x8x64xbf16>
    tpu.vector_store %arg6[%c0_9, %c0_10, %c0_11], %15 {strides = array<i32>} : memref<1x8x64xbf16, #tpu.memory_space<vmem>>, vector<1x8x64xbf16>,
    return
  }
  func.func @transform_0(%arg0: i32, %arg1: i32) -> (i32, i32, i32) {
    %c0_i32 = arith.constant 0 : i32
    %c0_i32_0 = arith.constant 0 : i32
    return %arg0, %c0_i32, %arg1 : i32, i32, i32
  }
  func.func @transform_1(%arg0: i32, %arg1: i32) -> (i32, i32) {
    %c0_i32 = arith.constant 0 : i32
    %c0_i32_0 = arith.constant 0 : i32
    %c0_i32_1 = arith.constant 0 : i32
    return %c0_i32, %c0_i32_0 : i32, i32
  }
  func.func @transform_2(%arg0: i32, %arg1: i32) -> (i32, i32) {
    %c0_i32 = arith.constant 0 : i32
    %c0_i32_0 = arith.constant 0 : i32
    %c0_i32_1 = arith.constant 0 : i32
    return %c0_i32, %c0_i32_0 : i32, i32
  }
  func.func @transform_3(%arg0: i32, %arg1: i32) -> (i32, i32) {
    %c0_i32 = arith.constant 0 : i32
    %c0_i32_0 = arith.constant 0 : i32
    %c0_i32_1 = arith.constant 0 : i32
    return %c0_i32, %c0_i32_0 : i32, i32
  }
  func.func @transform_4(%arg0: i32, %arg1: i32) -> (i32, i32, i32) {
    %c0_i32 = arith.constant 0 : i32
    %c0_i32_0 = arith.constant 0 : i32
    return %arg0, %c0_i32, %arg1 : i32, i32, i32
  }
}

module attributes {stable_mosaic.version = 11 : i64} {
  func.func @_conv_bn_kernel(%arg0: i32, %arg1: i32, %arg2: memref<1x216x64xbf16, #tpu.memory_space<vmem>>, %arg3: memref<8x216xbf16, #tpu.memory_space<vmem>>, %arg4: memref<8x1xf32, #tpu.memory_space<vmem>>, %arg5: memref<8x1xf32, #tpu.memory_space<vmem>>, %arg6: memref<1x8x64xbf16, #tpu.memory_space<vmem>>) attributes {dimension_semantics = [#tpu.dimension_semantics<parallel>, #tpu.dimension_semantics<parallel>], iteration_bounds = array<i64: 2, 1>, scalar_prefetch = 0 : i64, scratch_operands = 0 : i64, tpu.core_type = #tpu.core_type<tc>, window_params = [{transform_indices = @transform_0, window_bounds = array<i64: 1, 216, 64>}, {pipeline_mode = #tpu.pipeline_mode<synchronous>, transform_indices = @transform_1, window_bounds = array<i64: 8, 216>}, {pipeline_mode = #tpu.pipeline_mode<synchronous>, transform_indices = @transform_2, window_bounds = array<i64: 8, 1>}, {pipeline_mode = #tpu.pipeline_mode<synchronous>, transform_indices = @transform_3, window_bounds = array<i64: 8, 1>}, {transform_indices = @transform_4, window_bounds = array<i64: 1, 8, 64>}]} {
    %c0 = arith.constant 0 : index
    %c0_0 = arith.constant 0 : index
    %0 = vector.load %arg3[%c0, %c0_0] : memref<8x216xbf16, #tpu.memory_space<vmem>>, vector<8x216xbf16>
    %c0_1 = arith.constant 0 : index
    %c0_2 = arith.constant 0 : index
    %c0_3 = arith.constant 0 : index
    %1 = vector.load %arg2[%c0_1, %c0_2, %c0_3] : memref<1x216x64xbf16, #tpu.memory_space<vmem>>, vector<1x216x64xbf16>
    %2 = vector.shape_cast %1 : vector<1x216x64xbf16> to vector<216x64xbf16>
    %cst = arith.constant dense<0.000000e+00> : vector<8x64xf32>
    %3 = tpu.matmul %0, %2, %cst {dimension_numbers = #tpu.dot_dimension_numbers<[1], [0], [0], [1], [0, 0, 1, 1], [], []>} : vector<8x216xbf16>, vector<216x64xbf16>, vector<8x64xf32> -> vector<8x64xf32>
    %c0_4 = arith.constant 0 : index
    %c0_5 = arith.constant 0 : index
    %4 = vector.load %arg4[%c0_4, %c0_5] : memref<8x1xf32, #tpu.memory_space<vmem>>, vector<8x1xf32>
    %5 = vector.broadcast %4 : vector<8x1xf32> to vector<8x64xf32>
    %6 = arith.mulf %3, %5 : vector<8x64xf32>
    %c0_6 = arith.constant 0 : index
    %c0_7 = arith.constant 0 : index
    %7 = vector.load %arg5[%c0_6, %c0_7] : memref<8x1xf32, #tpu.memory_space<vmem>>, vector<8x1xf32>
    %8 = vector.broadcast %7 : vector<8x1xf32> to vector<8x64xf32>
    %9 = arith.addf %6, %8 : vector<8x64xf32>
    %cst_8 = arith.constant 0.000000e+00 : f32
    %10 = vector.broadcast %cst_8 : f32 to vector<8x64xf32>
    %11 = arith.maximumf %9, %10 : vector<8x64xf32>
    %12 = arith.truncf %11 : vector<8x64xf32> to vector<8x64xbf16>
    %c0_9 = arith.constant 0 : index
    %c0_10 = arith.constant 0 : index
    %c0_11 = arith.constant 0 : index
    %13 = vector.load %arg6[%c0_9, %c0_10, %c0_11] : memref<1x8x64xbf16, #tpu.memory_space<vmem>>, vector<1x8x64xbf16>
    %14 = vector.shape_cast %13 : vector<1x8x64xbf16> to vector<8x64xbf16>
    %15 = vector.shape_cast %12 : vector<8x64xbf16> to vector<1x8x64xbf16>
    tpu.vector_store %arg6[%c0_9, %c0_10, %c0_11], %15 {strides = array<i32>} : memref<1x8x64xbf16, #tpu.memory_space<vmem>>, vector<1x8x64xbf16>,
    return
  }
  func.func @transform_0(%arg0: i32, %arg1: i32) -> (i32, i32, i32) {
    %c0_i32 = arith.constant 0 : i32
    %c0_i32_0 = arith.constant 0 : i32
    return %arg0, %c0_i32, %arg1 : i32, i32, i32
  }
  func.func @transform_1(%arg0: i32, %arg1: i32) -> (i32, i32) {
    %c0_i32 = arith.constant 0 : i32
    %c0_i32_0 = arith.constant 0 : i32
    %c0_i32_1 = arith.constant 0 : i32
    return %c0_i32, %c0_i32_0 : i32, i32
  }
  func.func @transform_2(%arg0: i32, %arg1: i32) -> (i32, i32) {
    %c0_i32 = arith.constant 0 : i32
    %c0_i32_0 = arith.constant 0 : i32
    %c0_i32_1 = arith.constant 0 : i32
    return %c0_i32, %c0_i32_0 : i32, i32
  }
  func.func @transform_3(%arg0: i32, %arg1: i32) -> (i32, i32) {
    %c0_i32 = arith.constant 0 : i32
    %c0_i32_0 = arith.constant 0 : i32
    %c0_i32_1 = arith.constant 0 : i32
    return %c0_i32, %c0_i32_0 : i32, i32
  }
  func.func @transform_4(%arg0: i32, %arg1: i32) -> (i32, i32, i32) {
    %c0_i32 = arith.constant 0 : i32
    %c0_i32_0 = arith.constant 0 : i32
    return %arg0, %c0_i32, %arg1 : i32, i32, i32
  }
}

module attributes {stable_mosaic.version = 11 : i64} {
  func.func @_conv_bn_res_relu_kernel(%arg0: i32, %arg1: i32, %arg2: memref<1x216x64xbf16, #tpu.memory_space<vmem>>, %arg3: memref<8x216xbf16, #tpu.memory_space<vmem>>, %arg4: memref<8x1xf32, #tpu.memory_space<vmem>>, %arg5: memref<8x1xf32, #tpu.memory_space<vmem>>, %arg6: memref<1x8x64xbf16, #tpu.memory_space<vmem>>, %arg7: memref<1x8x64xbf16, #tpu.memory_space<vmem>>) attributes {dimension_semantics = [#tpu.dimension_semantics<parallel>, #tpu.dimension_semantics<parallel>], iteration_bounds = array<i64: 2, 1>, scalar_prefetch = 0 : i64, scratch_operands = 0 : i64, tpu.core_type = #tpu.core_type<tc>, window_params = [{transform_indices = @transform_0, window_bounds = array<i64: 1, 216, 64>}, {pipeline_mode = #tpu.pipeline_mode<synchronous>, transform_indices = @transform_1, window_bounds = array<i64: 8, 216>}, {pipeline_mode = #tpu.pipeline_mode<synchronous>, transform_indices = @transform_2, window_bounds = array<i64: 8, 1>}, {pipeline_mode = #tpu.pipeline_mode<synchronous>, transform_indices = @transform_3, window_bounds = array<i64: 8, 1>}, {transform_indices = @transform_4, window_bounds = array<i64: 1, 8, 64>}, {transform_indices = @transform_5, window_bounds = array<i64: 1, 8, 64>}]} {
    %c0 = arith.constant 0 : index
    %c0_0 = arith.constant 0 : index
    %0 = vector.load %arg3[%c0, %c0_0] : memref<8x216xbf16, #tpu.memory_space<vmem>>, vector<8x216xbf16>
    %c0_1 = arith.constant 0 : index
    %c0_2 = arith.constant 0 : index
    %c0_3 = arith.constant 0 : index
    %1 = vector.load %arg2[%c0_1, %c0_2, %c0_3] : memref<1x216x64xbf16, #tpu.memory_space<vmem>>, vector<1x216x64xbf16>
    %2 = vector.shape_cast %1 : vector<1x216x64xbf16> to vector<216x64xbf16>
    %cst = arith.constant dense<0.000000e+00> : vector<8x64xf32>
    %3 = tpu.matmul %0, %2, %cst {dimension_numbers = #tpu.dot_dimension_numbers<[1], [0], [0], [1], [0, 0, 1, 1], [], []>} : vector<8x216xbf16>, vector<216x64xbf16>, vector<8x64xf32> -> vector<8x64xf32>
    %c0_4 = arith.constant 0 : index
    %c0_5 = arith.constant 0 : index
    %4 = vector.load %arg4[%c0_4, %c0_5] : memref<8x1xf32, #tpu.memory_space<vmem>>, vector<8x1xf32>
    %5 = vector.broadcast %4 : vector<8x1xf32> to vector<8x64xf32>
    %6 = arith.mulf %3, %5 : vector<8x64xf32>
    %c0_6 = arith.constant 0 : index
    %c0_7 = arith.constant 0 : index
    %7 = vector.load %arg5[%c0_6, %c0_7] : memref<8x1xf32, #tpu.memory_space<vmem>>, vector<8x1xf32>
    %8 = vector.broadcast %7 : vector<8x1xf32> to vector<8x64xf32>
    %9 = arith.addf %6, %8 : vector<8x64xf32>
    %c0_8 = arith.constant 0 : index
    %c0_9 = arith.constant 0 : index
    %c0_10 = arith.constant 0 : index
    %10 = vector.load %arg6[%c0_8, %c0_9, %c0_10] : memref<1x8x64xbf16, #tpu.memory_space<vmem>>, vector<1x8x64xbf16>
    %11 = vector.shape_cast %10 : vector<1x8x64xbf16> to vector<8x64xbf16>
    %12 = arith.extf %11 : vector<8x64xbf16> to vector<8x64xf32>
    %13 = arith.addf %9, %12 : vector<8x64xf32>
    %cst_11 = arith.constant 0.000000e+00 : f32
    %14 = vector.broadcast %cst_11 : f32 to vector<8x64xf32>
    %15 = arith.maximumf %13, %14 : vector<8x64xf32>
    %16 = arith.truncf %15 : vector<8x64xf32> to vector<8x64xbf16>
    %c0_12 = arith.constant 0 : index
    %c0_13 = arith.constant 0 : index
    %c0_14 = arith.constant 0 : index
    %17 = vector.load %arg7[%c0_12, %c0_13, %c0_14] : memref<1x8x64xbf16, #tpu.memory_space<vmem>>, vector<1x8x64xbf16>
    %18 = vector.shape_cast %17 : vector<1x8x64xbf16> to vector<8x64xbf16>
    %19 = vector.shape_cast %16 : vector<8x64xbf16> to vector<1x8x64xbf16>
    tpu.vector_store %arg7[%c0_12, %c0_13, %c0_14], %19 {strides = array<i32>} : memref<1x8x64xbf16, #tpu.memory_space<vmem>>, vector<1x8x64xbf16>,
    return
  }
  func.func @transform_0(%arg0: i32, %arg1: i32) -> (i32, i32, i32) {
    %c0_i32 = arith.constant 0 : i32
    %c0_i32_0 = arith.constant 0 : i32
    return %arg0, %c0_i32, %arg1 : i32, i32, i32
  }
  func.func @transform_1(%arg0: i32, %arg1: i32) -> (i32, i32) {
    %c0_i32 = arith.constant 0 : i32
    %c0_i32_0 = arith.constant 0 : i32
    %c0_i32_1 = arith.constant 0 : i32
    return %c0_i32, %c0_i32_0 : i32, i32
  }
  func.func @transform_2(%arg0: i32, %arg1: i32) -> (i32, i32) {
    %c0_i32 = arith.constant 0 : i32
    %c0_i32_0 = arith.constant 0 : i32
    %c0_i32_1 = arith.constant 0 : i32
    return %c0_i32, %c0_i32_0 : i32, i32
  }
  func.func @transform_3(%arg0: i32, %arg1: i32) -> (i32, i32) {
    %c0_i32 = arith.constant 0 : i32
    %c0_i32_0 = arith.constant 0 : i32
    %c0_i32_1 = arith.constant 0 : i32
    return %c0_i32, %c0_i32_0 : i32, i32
  }
  func.func @transform_4(%arg0: i32, %arg1: i32) -> (i32, i32, i32) {
    %c0_i32 = arith.constant 0 : i32
    %c0_i32_0 = arith.constant 0 : i32
    return %arg0, %c0_i32, %arg1 : i32, i32, i32
  }
  func.func @transform_5(%arg0: i32, %arg1: i32) -> (i32, i32, i32) {
    %c0_i32 = arith.constant 0 : i32
    %c0_i32_0 = arith.constant 0 : i32
    return %arg0, %c0_i32, %arg1 : i32, i32, i32
  }
}

module attributes {stable_mosaic.version = 11 : i64} {
  func.func @_linear_sigmoid_kernel(%arg0: i32, %arg1: memref<2x512xbf16, #tpu.memory_space<vmem>>, %arg2: memref<1x512xf32, #tpu.memory_space<vmem>>, %arg3: memref<1x1xf32, #tpu.memory_space<vmem>>, %arg4: memref<2x1xf32, #tpu.memory_space<vmem>>) attributes {dimension_semantics = [#tpu.dimension_semantics<arbitrary>], iteration_bounds = array<i64: 1>, scalar_prefetch = 0 : i64, scratch_operands = 0 : i64, tpu.core_type = #tpu.core_type<tc>, window_params = [{pipeline_mode = #tpu.pipeline_mode<synchronous>, transform_indices = @transform_0, window_bounds = array<i64: 2, 512>}, {pipeline_mode = #tpu.pipeline_mode<synchronous>, transform_indices = @transform_1, window_bounds = array<i64: 1, 512>}, {pipeline_mode = #tpu.pipeline_mode<synchronous>, transform_indices = @transform_2, window_bounds = array<i64: 1, 1>}, {pipeline_mode = #tpu.pipeline_mode<synchronous>, transform_indices = @transform_3, window_bounds = array<i64: 2, 1>}]} {
    %c0 = arith.constant 0 : index
    %c0_0 = arith.constant 0 : index
    %0 = vector.load %arg1[%c0, %c0_0] : memref<2x512xbf16, #tpu.memory_space<vmem>>, vector<2x512xbf16>
    %1 = arith.extf %0 : vector<2x512xbf16> to vector<2x512xf32>
    %c0_1 = arith.constant 0 : index
    %c0_2 = arith.constant 0 : index
    %2 = vector.load %arg2[%c0_1, %c0_2] : memref<1x512xf32, #tpu.memory_space<vmem>>, vector<1x512xf32>
    %3 = vector.broadcast %2 : vector<1x512xf32> to vector<2x512xf32>
    %4 = arith.mulf %1, %3 : vector<2x512xf32>
    %cst = arith.constant dense<0.000000e+00> : vector<2xf32>
    %5 = vector.multi_reduction <add>, %4, %cst [1] : vector<2x512xf32> to vector<2xf32>
    %6 = vector.shape_cast %5 : vector<2xf32> to vector<2x1xf32>
    %c0_3 = arith.constant 0 : index
    %c0_4 = arith.constant 0 : index
    %7 = vector.load %arg3[%c0_3, %c0_4] : memref<1x1xf32, #tpu.memory_space<vmem>>, vector<1x1xf32>
    %8 = vector.broadcast %7 : vector<1x1xf32> to vector<2x1xf32>
    %9 = arith.addf %6, %8 : vector<2x1xf32>
    %cst_5 = arith.constant 0.000000e+00 : f32
    %10 = vector.broadcast %cst_5 : f32 to vector<2x1xf32>
    %11 = arith.subf %10, %9 : vector<2x1xf32>
    %12 = math.exp %11 : vector<2x1xf32>
    %cst_6 = arith.constant 1.000000e+00 : f32
    %13 = vector.broadcast %cst_6 : f32 to vector<2x1xf32>
    %14 = arith.addf %13, %12 : vector<2x1xf32>
    %cst_7 = arith.constant 1.000000e+00 : f32
    %15 = vector.broadcast %cst_7 : f32 to vector<2x1xf32>
    %16 = arith.divf %15, %14 : vector<2x1xf32>
    %c0_8 = arith.constant 0 : index
    %c0_9 = arith.constant 0 : index
    %17 = vector.load %arg4[%c0_8, %c0_9] : memref<2x1xf32, #tpu.memory_space<vmem>>, vector<2x1xf32>
    tpu.vector_store %arg4[%c0_8, %c0_9], %16 {strides = array<i32>} : memref<2x1xf32, #tpu.memory_space<vmem>>, vector<2x1xf32>,
    return
  }
  func.func @transform_0(%arg0: i32) -> (i32, i32) {
    %c0_i32 = arith.constant 0 : i32
    %c0_i32_0 = arith.constant 0 : i32
    %c0_i32_1 = arith.constant 0 : i32
    return %c0_i32, %c0_i32_0 : i32, i32
  }
  func.func @transform_1(%arg0: i32) -> (i32, i32) {
    %c0_i32 = arith.constant 0 : i32
    %c0_i32_0 = arith.constant 0 : i32
    %c0_i32_1 = arith.constant 0 : i32
    return %c0_i32, %c0_i32_0 : i32, i32
  }
  func.func @transform_2(%arg0: i32) -> (i32, i32) {
    %c0_i32 = arith.constant 0 : i32
    %c0_i32_0 = arith.constant 0 : i32
    %c0_i32_1 = arith.constant 0 : i32
    return %c0_i32, %c0_i32_0 : i32, i32
  }
  func.func @transform_3(%arg0: i32) -> (i32, i32) {
    %c0_i32 = arith.constant 0 : i32
    %c0_i32_0 = arith.constant 0 : i32
    %c0_i32_1 = arith.constant 0 : i32
    return %c0_i32, %c0_i32_0 : i32, i32
  }
}

</mosaic_0001>

<bundles_post_ra>
// kernel: fitness_estimator_forward.6
= control target key start
LH: loop header
LB: loop body
LE: loop exit
PB: predicated region body
PF: predicated region fallthrough
CT: control target
= control target key end

     0   :  { %s558_s15 = smov 0   ;;  %s560_s16 = smov 0   ;;  %s604_s0 = inlined_call_operand.vmem [shape: bf16[2,108,64], index: 0, kind: input, shape index: {}]   ;;  %s605_s1 = inlined_call_operand.vmem [shape: bf16[8,108], index: 1, kind: input, shape index: {}]   ;;  %s606_s2 = inlined_call_operand.vmem [shape: f32[8,1], index: 2, kind: input, shape index: {}]   ;;  %s607_s3 = inlined_call_operand.vmem [shape: f32[8,1], index: 3, kind: input, shape index: {}]   ;;  %s608_s4 = inlined_call_operand.vmem [shape: bf16[2,8,64], index: 4, kind: output, shape index: {}]  }
   0x1   :  { %s562_s17 = smov 0  }
   0x2 LB: > { %s26_s18 = sadd.s32 1, %s524_s16  ;;  %p431_p0 = scmp.ge.s32.totalorder %s528_s17, 1  ;;  %s528_s17 = sphi %s562_s17, %s14_s17   ;;  %s524_s16 = sphi %s560_s16, %s610_s16   ;;  %s520_s15 = sphi %s558_s15, %s609_s15  }
   0x3   : > { %p28_p1 = scmp.ge.s32.totalorder %s26_s18, 2  ;;  %p181_p2 = scmp.lt.s32.totalorder %s528_s17, 3 }
   0x5   : > { %s612_s18 = smov (%p28_p1, %s26_s18), 0  ;;  %p182_p3 = pnand %p431_p0, %p181_p2 }
   0x6   : > { %p212_p4 = scmp.lt.s32.totalorder (!%p182_p3), %s520_s15, 1 }
   0x7   : > { %185 = sbr.rel (%p182_p3) target bundleno = 247 (0xf7), region = 36 }
   0xc   : > { %v530_v0 = vmov 0.0   ;;  %vm531_vm0 = vmmov 0   ;;  %v332_v1 = vld [vmem:[%s606_s2] sm:$0xff]  ;;  %s614_s15 = smov (!%p212_p4, %s520_s15), 1  ;;  %v532_v2 = vmov 0   ;;  %vm288_vm1 = vcmask 1045504  }
   0xd   : > { %452 = vmatprep.subr.bf16.mxu0 %v530_v0  ;;  %466 = vmatprep.mubr.msk.bf16.mxu0 %vm531_vm0, %v530_v0  ;;  %s470_s21 = smul.u32 56, %s614_s15  ;;  %v339_v3 = vld [vmem:[%s607_s3] sm:$0xff]  ;;  %vm284_vm2 = vcmask 883712   ;;  %s433_s29 = sshll.u32 %s614_s15, 2  ;;  %vm348_vm3 = vcmask 519168  }
   0xe   : > { %498 = vset.pattern.permute.xlu0 %v532_v2  ;;  %v228_v12 = vld [vmem:[%s605_s1] sm:$0xf]  ;;  %s226_s6 = scalar_lea.vmem %s608_s4, %s433_s29 }
   0xf   : > { %335 = vperm.xlu0 %498, %v332_v1   ;;  %s219_s26 = scalar_lea.vmem %s604_s0, %s470_s21 }
  0x10   : > { %v499_v4 = vld [vmem:[%s219_s26 + $0x30] sm:$0x3f]   ;;  %v500_v6 = vld [vmem:[%s219_s26 + $0x28] sm:$0xff]   ;;  %v501_v7 = vld [vmem:[%s219_s26 + $0x20] sm:$0xff]  }
  0x11   : > { %v290_v5 = vsel %vm288_vm1, %v499_v4, 0  ;;  %v502_v8 = vld [vmem:[%s219_s26 + $0x18] sm:$0xff]   ;;  %v503_v9 = vld [vmem:[%s219_s26 + $0x10] sm:$0xff]   ;;  %v504_v10 = vld [vmem:[%s219_s26 + $0x8] sm:$0xff]  }
  0x12   : > { %453 = vmatpush3.bf16.msra.mxu0 %v290_v5  ;;  %v505_v11 = vld [vmem:[%s219_s26] sm:$0xff]  }
  0x13   : > { %342 = vperm.xlu0 %498, %v339_v3   ;;  %454 = vmatprep.subr.bf16.mxu0 %v530_v0 }
  0x16   : > { %455 = vmatpush3.bf16.msra.mxu0 %v500_v6 }
  0x17   : > { %456 = vmatprep.subr.bf16.mxu0 %v530_v0 }
  0x1a   : > { %457 = vmatpush3.bf16.msra.mxu0 %v501_v7 }
  0x1b   : > { %458 = vmatprep.subr.bf16.mxu0 %v530_v0 }
  0x1e   : > { %459 = vmatpush3.bf16.msra.mxu0 %v502_v8 }
  0x1f   : > { %460 = vmatprep.subr.bf16.mxu0 %v530_v0 }
  0x22   : > { %461 = vmatpush3.bf16.msra.mxu0 %v503_v9 }
  0x23   : > { %462 = vmatprep.subr.bf16.mxu0 %v530_v0 }
  0x26   : > { %463 = vmatpush3.bf16.msra.mxu0 %v504_v10 }
  0x27   : > { %464 = vmatprep.subr.bf16.mxu0 %v530_v0 }
  0x2a   : > { %465 = vmatpush3.bf16.msra.mxu0 %v505_v11 }
  0x2d   : > { %467 = vmatmul.mubr.msk.bf16.vlgmr.msra.gmra.mxu0 %vm284_vm2, %v228_v12 }
  0x8a   : > { %v336_v13 = vpop.permute.xlu0 %335 }
  0x8e   : > { %v343_v16 = vpop.permute.xlu0 %342 }
  0xed   : > { %v326_v14 = vpop.f32.mrf.mxu0 }
  0xee   : > { %v338_v15 = vmul.f32 %v336_v13, %v326_v14 }
  0xef   : > { %v468_v17 = vpop.f32.mrf.mxu0 }
  0xf0   : > { %v345_v18 = vadd.f32 %v343_v16, %v338_v15 }
  0xf1   : > { %v329_v19 = vpop.f32.mrf.mxu0 }
  0xf2   : > { %v346_v20 = vmax.f32 %v345_v18, 0.0 }
  0xf3   : > { %v469_v21 = vpop.f32.mrf.mxu0 }
  0xf4   : > { %v347_v22 = vpack.c.bf16 %v346_v20, %v346_v20 }
  0xf6   : > { %349 = vst.msk [vmem:[%s226_s6] sm:$0xf] %vm348_vm3, %v347_v22 }
  0xf7 PF: > { %s14_s17 = sadd.s32 1, %s528_s17   ;;  %s609_s15 = smov %s524_s16 }
  0xf8   : > { %p11_p5 = scmp.ge.s32.totalorder %s14_s17, 4   ;;  %s610_s16 = smov %s612_s18 }
  0xfa   :  { %13 = sbr.rel (!%p11_p5) target bundleno = 2 (0x2), region = 66 }

// kernel: fitness_estimator_forward.7
= control target key start
LH: loop header
LB: loop body
LE: loop exit
PB: predicated region body
PF: predicated region fallthrough
CT: control target
= control target key end

     0   :  { %s605_s15 = smov 0   ;;  %s607_s16 = smov 0   ;;  %s667_s0 = inlined_call_operand.vmem [shape: bf16[2,216,64], index: 0, kind: input, shape index: {}]   ;;  %s668_s1 = inlined_call_operand.vmem [shape: bf16[8,216], index: 1, kind: input, shape index: {}]   ;;  %s669_s2 = inlined_call_operand.vmem [shape: f32[8,1], index: 2, kind: input, shape index: {}]   ;;  %s670_s3 = inlined_call_operand.vmem [shape: f32[8,1], index: 3, kind: input, shape index: {}]   ;;  %s671_s4 = inlined_call_operand.vmem [shape: bf16[2,8,64], index: 4, kind: output, shape index: {}]  }
   0x1   :  { %s609_s17 = smov 0  }
   0x2 LB: > { %s26_s18 = sadd.s32 1, %s573_s16  ;;  %p490_p0 = scmp.ge.s32.totalorder %s577_s17, 1  ;;  %s577_s17 = sphi %s609_s17, %s14_s17   ;;  %s573_s16 = sphi %s607_s16, %s673_s16   ;;  %s569_s15 = sphi %s605_s15, %s672_s15  }
   0x3   : > { %p28_p1 = scmp.ge.s32.totalorder %s26_s18, 2  ;;  %p181_p2 = scmp.lt.s32.totalorder %s577_s17, 3 }
   0x5   : > { %s675_s18 = smov (%p28_p1, %s26_s18), 0  ;;  %p182_p3 = pnand %p490_p0, %p181_p2 }
   0x6   : > { %p212_p4 = scmp.lt.s32.totalorder (!%p182_p3), %s569_s15, 1 }
   0x7   : > { %185 = sbr.rel (%p182_p3) target bundleno = 274 (0x112), region = 36 }
   0xc   : > { %v228_v0 = vld [vmem:[%s668_s1] sm:$0xff]  ;;  %vm343_vm0 = vcmask 719872   ;;  %v579_v2 = vmov 0   ;;  %s677_s15 = smov (!%p212_p4, %s569_s15), 1  ;;  %vm347_vm1 = vcmask 1043456   ;;  %vm407_vm2 = vcmask 519168  }
   0xd   : > { %v391_v1 = vld [vmem:[%s669_s2] sm:$0xff]  ;;  %351 = vmatprep.subr.bf16.mxu0 %v579_v2  ;;  %v494_v3 = vcombine.high %v228_v0, %v228_v0  ;;  %538 = vset.pattern.permute.xlu0 %v579_v2  ;;  %s512_s25 = smul.u32 108, %s677_s15  ;;  %v493_v20 = vcombine.low %v228_v0, %v228_v0  ;;  %s492_s29 = sshll.u32 %s677_s15, 2 }
   0xe   : > { %394 = vperm.xlu0 %538, %v391_v1   ;;  %v398_v4 = vld [vmem:[%s670_s3] sm:$0xff]  ;;  %s226_s6 = scalar_lea.vmem %s671_s4, %s492_s29 }
   0xf   : > { %509 = vmatprep.mubr.msk.bf16.mxu0 %vm343_vm0, %v494_v3  ;;  %s638_s28 = scalar_lea.vmem %s667_s0, %s512_s25 }
  0x10   : > { %v539_v5 = vld [vmem:[%s638_s28 + $0x38] sm:$0xff]   ;;  %v540_v6 = vld [vmem:[%s638_s28 + $0x30] sm:$0xff]   ;;  %v541_v7 = vld [vmem:[%s638_s28 + $0x28] sm:$0xff]  }
  0x11   : > { %352 = vmatpush1.bf16.msra.mxu0 %v539_v5  ;;  %v542_v8 = vld [vmem:[%s638_s28 + $0x20] sm:$0xff]   ;;  %v543_v9 = vld [vmem:[%s638_s28 + $0x18] sm:$0xff]   ;;  %v544_v10 = vld [vmem:[%s638_s28 + $0x10] sm:$0xff]  }
  0x12   : > { %401 = vperm.xlu0 %538, %v398_v4   ;;  %353 = vmatprep.subr.bf16.mxu0 %v579_v2  ;;  %v545_v11 = vld [vmem:[%s638_s28 + $0x8] sm:$0xff]   ;;  %v546_v12 = vld [vmem:[%s638_s28] sm:$0xff]   ;;  %v549_v16 = vld [vmem:[%s638_s28 + $0x58] sm:$0xff]  }
  0x13   : > { %v547_v13 = vld [vmem:[%s638_s28 + $0x68] ss:$0 sps:$4 sm:$0xff]   ;;  %v548_v15 = vld [vmem:[%s638_s28 + $0x60] sm:$0xff]   ;;  %v550_v17 = vld [vmem:[%s638_s28 + $0x50] sm:$0xff]  }
  0x14   : > { %v349_v14 = vsel %vm347_vm1, %v547_v13, 0  ;;  %v551_v18 = vld [vmem:[%s638_s28 + $0x48] sm:$0xff]   ;;  %v552_v19 = vld [vmem:[%s638_s28 + $0x40] sm:$0xff]  }
  0x15   : > { %354 = vmatpush1.bf16.msra.mxu0 %v540_v6 }
  0x16   : > { %355 = vmatprep.subr.bf16.mxu0 %v579_v2 }
  0x19   : > { %356 = vmatpush1.bf16.msra.mxu0 %v541_v7 }
  0x1a   : > { %357 = vmatprep.subr.bf16.mxu0 %v579_v2 }
  0x1d   : > { %358 = vmatpush1.bf16.msra.mxu0 %v542_v8 }
  0x1e   : > { %359 = vmatprep.subr.bf16.mxu0 %v579_v2 }
  0x21   : > { %360 = vmatpush1.bf16.msra.mxu0 %v543_v9 }
  0x22   : > { %361 = vmatprep.subr.bf16.mxu0 %v579_v2 }
  0x25   : > { %362 = vmatpush1.bf16.msra.mxu0 %v544_v10 }
  0x26   : > { %363 = vmatprep.subr.bf16.mxu0 %v579_v2 }
  0x29   : > { %364 = vmatpush1.bf16.msra.mxu0 %v545_v11 }
  0x2a   : > { %365 = vmatprep.subr.bf16.mxu0 %v579_v2 }
  0x2d   : > { %366 = vmatpush1.bf16.msra.mxu0 %v546_v12 }
  0x2e   : > { %371 = vmatprep.subr.bf16.mxu0 %v579_v2 }
  0x31   : > { %372 = vmatpush2.bf16.msra.mxu0 %v349_v14 }
  0x32   : > { %373 = vmatprep.subr.bf16.mxu0 %v579_v2 }
  0x35   : > { %374 = vmatpush2.bf16.msra.mxu0 %v548_v15 }
  0x36   : > { %375 = vmatprep.subr.bf16.mxu0 %v579_v2 }
  0x39   : > { %376 = vmatpush2.bf16.msra.mxu0 %v549_v16 }
  0x3a   : > { %377 = vmatprep.subr.bf16.mxu0 %v579_v2 }
  0x3d   : > { %378 = vmatpush2.bf16.msra.mxu0 %v550_v17 }
  0x3e   : > { %379 = vmatprep.subr.bf16.mxu0 %v579_v2 }
  0x41   : > { %380 = vmatpush2.bf16.msra.mxu0 %v551_v18 }
  0x42   : > { %381 = vmatprep.subr.bf16.mxu0 %v579_v2 }
  0x45   : > { %382 = vmatpush2.bf16.msra.mxu0 %v552_v19 }
  0x48   : > { %384 = vmatmul.mubr.bf16.vlgmr.msra.gmra.mxu0 %v493_v20 }
  0x89   : > { %v395_v21 = vpop.permute.xlu0 %394 }
  0x8d   : > { %v402_v24 = vpop.permute.xlu0 %401 }
 0x108   : > { %v385_v22 = vpop.f32.mrf.mxu0 }
 0x109   : > { %v397_v23 = vmul.f32 %v395_v21, %v385_v22 }
 0x10a   : > { %v387_v25 = vpop.f32.mrf.mxu0 }
 0x10b   : > { %v404_v26 = vadd.f32 %v402_v24, %v397_v23 }
 0x10c   : > { %v388_v27 = vpop.f32.mrf.mxu0 }
 0x10d   : > { %v405_v28 = vmax.f32 %v404_v26, 0.0 }
 0x10e   : > { %v389_v29 = vpop.f32.mrf.mxu0 }
 0x10f   : > { %v406_v30 = vpack.c.bf16 %v405_v28, %v405_v28 }
 0x111   : > { %408 = vst.msk [vmem:[%s226_s6] sm:$0xf] %vm407_vm2, %v406_v30 }
 0x112 PF: > { %s14_s17 = sadd.s32 1, %s577_s17   ;;  %s672_s15 = smov %s573_s16 }
 0x113   : > { %p11_p5 = scmp.ge.s32.totalorder %s14_s17, 4   ;;  %s673_s16 = smov %s675_s18 }
 0x115   :  { %13 = sbr.rel (!%p11_p5) target bundleno = 2 (0x2), region = 66 }

// kernel: fitness_estimator_forward.8
= control target key start
LH: loop header
LB: loop body
LE: loop exit
PB: predicated region body
PF: predicated region fallthrough
CT: control target
= control target key end

     0   :  { %s684_s18 = smov 0   ;;  %s686_s19 = smov 0   ;;  %s749_s0 = inlined_call_operand.vmem [shape: bf16[2,216,64], index: 0, kind: input, shape index: {}]   ;;  %s750_s1 = inlined_call_operand.vmem [shape: bf16[8,216], index: 1, kind: input, shape index: {}]   ;;  %s751_s2 = inlined_call_operand.vmem [shape: f32[8,1], index: 2, kind: input, shape index: {}]   ;;  %s752_s3 = inlined_call_operand.vmem [shape: f32[8,1], index: 3, kind: input, shape index: {}]   ;;  %s753_s4 = inlined_call_operand.vmem [shape: bf16[2,8,64], index: 4, kind: input, shape index: {}]   ;;  %s754_s5 = inlined_call_operand.vmem [shape: bf16[2,8,64], index: 5, kind: output, shape index: {}]  }
   0x1   :  { %s688_s20 = smov 0  }
   0x2 LB: > { %s27_s21 = sadd.s32 1, %s647_s19  ;;  %p563_p0 = scmp.ge.s32.totalorder %s651_s20, 1  ;;  %s651_s20 = sphi %s688_s20, %s15_s20   ;;  %s647_s19 = sphi %s686_s19, %s756_s19   ;;  %s643_s18 = sphi %s684_s18, %s755_s18  }
   0x3   : > { %p29_p1 = scmp.ge.s32.totalorder %s27_s21, 2  ;;  %p220_p2 = scmp.lt.s32.totalorder %s651_s20, 3 }
   0x5   : > { %s758_s21 = smov (%p29_p1, %s27_s21), 0  ;;  %p221_p3 = pnand %p563_p0, %p220_p2 }
   0x6   : > { %p260_p4 = scmp.lt.s32.totalorder (!%p221_p3), %s643_s18, 1 }
   0x7   : > { %224 = sbr.rel (%p221_p3) target bundleno = 276 (0x114), region = 40 }
   0xc   : > { %v283_v0 = vld [vmem:[%s750_s1] sm:$0xff]  ;;  %vm398_vm0 = vcmask 719872   ;;  %v653_v2 = vmov 0   ;;  %s760_s18 = smov (!%p260_p4, %s643_s18), 1  ;;  %vm402_vm1 = vcmask 1043456   ;;  %vm465_vm2 = vcmask 519168  }
   0xd   : > { %v446_v1 = vld [vmem:[%s751_s2] sm:$0xff]  ;;  %406 = vmatprep.subr.bf16.mxu0 %v653_v2  ;;  %v568_v3 = vcombine.high %v283_v0, %v283_v0  ;;  %612 = vset.pattern.permute.xlu0 %v653_v2  ;;  %s586_s28 = smul.u32 108, %s760_s18  ;;  %v567_v20 = vcombine.low %v283_v0, %v283_v0  ;;  %s565_s7 = sshll.u32 %s760_s18, 2 }
   0xe   : > { %449 = vperm.xlu0 %612, %v446_v1   ;;  %v453_v4 = vld [vmem:[%s752_s3] sm:$0xff]  ;;  %s274_s10 = scalar_lea.vmem %s753_s4, %s565_s7  ;;  %s281_s13 = scalar_lea.vmem %s754_s5, %s565_s7 }
   0xf   : > { %583 = vmatprep.mubr.msk.bf16.mxu0 %vm398_vm0, %v568_v3  ;;  %s717_s6 = scalar_lea.vmem %s749_s0, %s586_s28  ;;  %v460_v22 = vld [vmem:[%s274_s10] sm:$0xf] }
  0x10   : > { %v613_v5 = vld [vmem:[%s717_s6 + $0x38] sm:$0xff]   ;;  %v614_v6 = vld [vmem:[%s717_s6 + $0x30] sm:$0xff]   ;;  %v615_v7 = vld [vmem:[%s717_s6 + $0x28] sm:$0xff]   ;;  %v461_v25 = vunpack.c.l.bf16 %v460_v22 }
  0x11   : > { %407 = vmatpush1.bf16.msra.mxu0 %v613_v5  ;;  %v616_v8 = vld [vmem:[%s717_s6 + $0x20] sm:$0xff]   ;;  %v617_v9 = vld [vmem:[%s717_s6 + $0x18] sm:$0xff]   ;;  %v618_v10 = vld [vmem:[%s717_s6 + $0x10] sm:$0xff]  }
  0x12   : > { %456 = vperm.xlu0 %612, %v453_v4   ;;  %408 = vmatprep.subr.bf16.mxu0 %v653_v2  ;;  %v619_v11 = vld [vmem:[%s717_s6 + $0x8] sm:$0xff]   ;;  %v620_v12 = vld [vmem:[%s717_s6] sm:$0xff]   ;;  %v623_v16 = vld [vmem:[%s717_s6 + $0x58] sm:$0xff]  }
  0x13   : > { %v621_v13 = vld [vmem:[%s717_s6 + $0x68] ss:$0 sps:$4 sm:$0xff]   ;;  %v622_v15 = vld [vmem:[%s717_s6 + $0x60] sm:$0xff]   ;;  %v624_v17 = vld [vmem:[%s717_s6 + $0x50] sm:$0xff]  }
  0x14   : > { %v404_v14 = vsel %vm402_vm1, %v621_v13, 0  ;;  %v625_v18 = vld [vmem:[%s717_s6 + $0x48] sm:$0xff]   ;;  %v626_v19 = vld [vmem:[%s717_s6 + $0x40] sm:$0xff]  }
  0x15   : > { %409 = vmatpush1.bf16.msra.mxu0 %v614_v6 }
  0x16   : > { %410 = vmatprep.subr.bf16.mxu0 %v653_v2 }
  0x19   : > { %411 = vmatpush1.bf16.msra.mxu0 %v615_v7 }
  0x1a   : > { %412 = vmatprep.subr.bf16.mxu0 %v653_v2 }
  0x1d   : > { %413 = vmatpush1.bf16.msra.mxu0 %v616_v8 }
  0x1e   : > { %414 = vmatprep.subr.bf16.mxu0 %v653_v2 }
  0x21   : > { %415 = vmatpush1.bf16.msra.mxu0 %v617_v9 }
  0x22   : > { %416 = vmatprep.subr.bf16.mxu0 %v653_v2 }
  0x25   : > { %417 = vmatpush1.bf16.msra.mxu0 %v618_v10 }
  0x26   : > { %418 = vmatprep.subr.bf16.mxu0 %v653_v2 }
  0x29   : > { %419 = vmatpush1.bf16.msra.mxu0 %v619_v11 }
  0x2a   : > { %420 = vmatprep.subr.bf16.mxu0 %v653_v2 }
  0x2d   : > { %421 = vmatpush1.bf16.msra.mxu0 %v620_v12 }
  0x2e   : > { %426 = vmatprep.subr.bf16.mxu0 %v653_v2 }
  0x31   : > { %427 = vmatpush2.bf16.msra.mxu0 %v404_v14 }
  0x32   : > { %428 = vmatprep.subr.bf16.mxu0 %v653_v2 }
  0x35   : > { %429 = vmatpush2.bf16.msra.mxu0 %v622_v15 }
  0x36   : > { %430 = vmatprep.subr.bf16.mxu0 %v653_v2 }
  0x39   : > { %431 = vmatpush2.bf16.msra.mxu0 %v623_v16 }
  0x3a   : > { %432 = vmatprep.subr.bf16.mxu0 %v653_v2 }
  0x3d   : > { %433 = vmatpush2.bf16.msra.mxu0 %v624_v17 }
  0x3e   : > { %434 = vmatprep.subr.bf16.mxu0 %v653_v2 }
  0x41   : > { %435 = vmatpush2.bf16.msra.mxu0 %v625_v18 }
  0x42   : > { %436 = vmatprep.subr.bf16.mxu0 %v653_v2 }
  0x45   : > { %437 = vmatpush2.bf16.msra.mxu0 %v626_v19 }
  0x48   : > { %439 = vmatmul.mubr.bf16.vlgmr.msra.gmra.mxu0 %v567_v20 }
  0x89   : > { %v450_v21 = vpop.permute.xlu0 %449 }
  0x8d   : > { %v457_v26 = vpop.permute.xlu0 %456 }
 0x108   : > { %v440_v23 = vpop.f32.mrf.mxu0 }
 0x109   : > { %v452_v24 = vmul.f32 %v450_v21, %v440_v23 }
 0x10a   : > { %v442_v27 = vpop.f32.mrf.mxu0 }
 0x10b   : > { %v459_v28 = vadd.f32 %v457_v26, %v452_v24 }
 0x10c   : > { %v443_v29 = vpop.f32.mrf.mxu0 }
 0x10d   : > { %v462_v30 = vadd.f32 %v461_v25, %v459_v28 }
 0x10e   : > { %v444_v31 = vpop.f32.mrf.mxu0 }
 0x10f   : > { %v463_v32 = vmax.f32 %v462_v30, 0.0 }
 0x111   : > { %v464_v33 = vpack.c.bf16 %v463_v32, %v463_v32 }
 0x113   : > { %466 = vst.msk [vmem:[%s281_s13] sm:$0xf] %vm465_vm2, %v464_v33 }
 0x114 PF: > { %s15_s20 = sadd.s32 1, %s651_s20   ;;  %s755_s18 = smov %s647_s19 }
 0x115   : > { %p12_p5 = scmp.ge.s32.totalorder %s15_s20, 4   ;;  %s756_s19 = smov %s758_s21 }
 0x117   :  { %14 = sbr.rel (!%p12_p5) target bundleno = 2 (0x2), region = 73 }

// kernel: fitness_estimator_forward.11
= control target key start
LH: loop header
LB: loop body
LE: loop exit
PB: predicated region body
PF: predicated region fallthrough
CT: control target
= control target key end

     0   :  { %v20_v0 = vlaneseq  ;;  %v113_v1 = vmov 1983009808   ;;  %vm77_vm0 = vcmask 1041408   ;;  %vm101_vm1 = vcmask 1024   ;;  %s146_s1 = inlined_call_operand.vmem [shape: f32[1,512], index: 1, kind: input, shape index: {}]   ;;  %s147_s2 = inlined_call_operand.<no memory space> [shape: f32[1,1], index: 2, kind: input, shape index: {}]   ;;  %s148_s0 = inlined_call_operand.vmem [shape: bf16[2,512], index: 0, kind: input, shape index: {}]   ;;  %s149_s3 = inlined_call_operand.vmem [shape: f32[2,1], index: 3, kind: output, shape index: {}]  }
   0x1   :  { %v39_v2 = vunpack.c.l.s4 %v113_v1  ;;  %v8_v3 = vstv %s147_s2  ;;  %v18_v5 = vld [vmem:[%s146_s1] sm:$0xf] }
   0x2   :  { %v21_v4 = vshrl.u32 %v20_v0, 7  ;;  %9 = vst [vmem:[#allocation2] sm:$0x1] %v8_v3  ;;  %v16_v16 = vld [vmem:[%s148_s0] sm:$0xf] }
   0x3   :  { %v40_v6 = vunpack.c.0.s8 %v39_v2  ;;  %v17_v19 = vunpack.c.l.bf16 %v16_v16 }
   0x4   :  { %v22_v7 = vsub.s32 0, %v21_v4  ;;  %v26_v8 = vsub.s32 1, %v21_v4  ;;  %v30_v9 = vsub.s32 2, %v21_v4  ;;  %v34_v10 = vsub.s32 3, %v21_v4 }
   0x5   :  { %v43_v11 = vsub.s32 %v40_v6, %v21_v4 }
   0x6   :  { %v23_v12 = vrot.slane %v18_v5, %v22_v7  ;;  %v27_v13 = vrot.slane %v18_v5, %v26_v8  ;;  %v31_v14 = vrot.slane %v18_v5, %v30_v9  ;;  %v35_v15 = vrot.slane %v18_v5, %v34_v10 }
   0x8   :  { %v36_v17 = vcombine.low %v23_v12, %v27_v13  ;;  %v37_v18 = vcombine.low %v31_v14, %v35_v15 }
   0x9   :  { %v107_v36 = vld [vmem:[#allocation2] ss:$0 sm:$0xff] }
   0xa   :  { %v44_v20 = vrot.slane %v36_v17, %v43_v11  ;;  %v51_v21 = vrot.slane %v37_v18, %v43_v11 }
   0xc   :  { %v52_v22 = vcombine.low %v44_v20, %v51_v21 }
   0xe   :  { %v54_v23 = vmul.f32 %v52_v22, %v17_v19 }
  0x10   :  { %v56_v24 = vcombine.high %v54_v23, %v54_v23  ;;  %v63_v25 = vrot.slane %v54_v23, %v43_v11 }
  0x12   :  { %v70_v26 = vrot.slane %v56_v24, %v43_v11  ;;  %v71_v27 = vcombine.high %v63_v25, %v63_v25  ;;  %v78_v28 = vsel %vm77_vm0, %v63_v25, 0.0 }
  0x14   :  { %v72_v29 = vcombine.high %v70_v26, %v70_v26  ;;  %v79_v30 = vsel %vm77_vm0, %v71_v27, 0.0  ;;  %v81_v31 = vsel %vm77_vm0, %v70_v26, 0.0 }
  0x15   :  { %v80_v32 = vadd.f32 %v79_v30, %v78_v28 }
  0x16   :  { %v83_v33 = vsel %vm77_vm0, %v72_v29, 0.0 }
  0x17   :  { %v82_v34 = vadd.f32 %v81_v31, %v80_v32 }
  0x19   :  { %v84_v35 = vadd.f32 %v83_v33, %v82_v34 }
  0x1b   :  { %85 = vadd.xlane.f32.xlu0 %v84_v35 }
  0xa4   :  { %v86_v37 = vpop.xlane.xlu0 %85 }
  0xa5   :  { %v94_v38 = vadd.f32 %v107_v36, %v86_v37 }
  0xa7   :  { %v95_v39 = vsub.f32 0.0, %v94_v38 }
  0xa9   :  { %v96_v40 = vmul.f32 1.442695, %v95_v39 }
  0xab   :  { %109 = vpow2.f32 %v96_v40 }
  0xb8   :  { %v110_v41 = vpop.eup %109 }
  0xb9   :  { %v98_v42 = vadd.f32 1.0, %v110_v41 }
  0xbb   :  { %111 = vrcp.f32 %v98_v42 }
  0xc8   :  { %v112_v43 = vpop.eup %111 }
  0xc9   :  { %102 = vst.msk [vmem:[%s149_s3] sm:$0x3] %vm101_vm1, %v112_v43 }

</bundles_post_ra>
